<compile_context>
chip_gen: v5e
topology: v5e:2x2
jax: 0.10.0
libtpu: 0.0.40
codegen_flags: <defaults>
</compile_context>

<pallas_src>
import math
import functools
import numpy as np

import jax
import jax.numpy as jnp
from jax.experimental import pallas as pl
from jax.experimental.pallas import tpu as pltpu

# ----------------------------- module constants -----------------------------
IN_CHANNELS = 3                      # pos_dim
NR_LEVELS = 24
NR_FEAT_PER_LEVEL = 2
CAPACITY = 2 ** 18
GEOM_FEAT_SIZE_OUT = 32
HIDDEN = 32
CONCAT_POINTS_SCALING = 1e-3
SDF_SHIFT = 0.01
NR_ITERS_FOR_C2F = 1000

ENC_DIM = NR_LEVELS * NR_FEAT_PER_LEVEL + IN_CHANNELS    # 51 (concat_points=True)
OUT_DIM = 1 + GEOM_FEAT_SIZE_OUT                          # 33
SDF_PAD = 8                                               # sdf row padded to 8 sublanes


def _round_up(x, m):
    return (x + m - 1) // m * m


def _cdiv(a, b):
    return -(-a // b)


def _gelu_dtype_for_device():
    """bf16 GELU on v6e/v7x (bf16 VPU/EUP); f32 on v5e and older."""
    try:
        kind = jax.devices()[0].device_kind.lower()
    except Exception:
        return jnp.float32
    if any(tag in kind for tag in ("v2", "v3", "v4", "v5")):
        return jnp.float32
    return jnp.bfloat16


# ----------------------------- Pallas MLP kernel ----------------------------
_SQRT_2_OVER_PI = math.sqrt(2.0 / math.pi)


def _gelu_tanh(x):
    # tanh-approximate GELU; tanh rides the EUP slot instead of ~20 VALU ops.
    # Differs from torch.nn.GELU(approximate='none') by ~1e-3.
    return 0.5 * x * (1.0 + jnp.tanh(_SQRT_2_OVER_PI * (x + 0.044715 * x * x * x)))


def mlp_sdf_kernel(xT_ref, w1_ref, b1_ref, w2_ref, b2_ref, w3_ref, b3_ref,
                   w4s_ref, b4s_ref, w4g_ref, b4g_ref,
                   o_sdf_ref, o_geom_ref, *, gelu_dtype):
    # Transposed layout: activations are (feat, tile_n) so the point axis
    # (a multiple of 256 lanes) is lane-dense for every matmul and store.
    x = xT_ref[...]                                                   # (51, tn) bf16

    h = jnp.dot(w1_ref[...], x, preferred_element_type=jnp.float32) + b1_ref[...]
    h = _gelu_tanh(h.astype(gelu_dtype)).astype(jnp.bfloat16)         # (32, tn)

    h = jnp.dot(w2_ref[...], h, preferred_element_type=jnp.float32) + b2_ref[...]
    h = _gelu_tanh(h.astype(gelu_dtype)).astype(jnp.bfloat16)

    h = jnp.dot(w3_ref[...], h, preferred_element_type=jnp.float32) + b3_ref[...]
    h = _gelu_tanh(h.astype(gelu_dtype)).astype(jnp.bfloat16)

    # Split last layer: sdf head (row 0 real, rows 1..7 zero padding) stays f32,
    # geom_feat head (32 rows) is stored bf16 to shrink the dominant HBM stream.
    o_sdf_ref[...] = (jnp.dot(w4s_ref[...], h, preferred_element_type=jnp.float32)
                      + b4s_ref[...])                                 # (8, tn) f32
    g = jnp.dot(w4g_ref[...], h, preferred_element_type=jnp.float32) + b4g_ref[...]
    o_geom_ref[...] = g.astype(jnp.bfloat16)                          # (32, tn) bf16


def mlp_sdf_pallas(featsT, params, tile_n=8192):
    """featsT: (ENC_DIM, N) bf16.  Returns ((SDF_PAD, N) f32, (32, N) bf16)."""
    f, n = featsT.shape

    # --- tile selection: big tiles, small padding, >=2 grid steps for megacore.
    n256 = _round_up(n, 256)
    tile_n = max(256, min(tile_n, n256))
    grid_len = max(1, _cdiv(n256, tile_n))
    if grid_len < 2 and n256 > 256:
        grid_len = 2                       # v7x: let both TensorCores work
    tile_n = _round_up(_cdiv(n256, grid_len), 256)
    n_pad = tile_n * grid_len
    if n_pad != n:
        featsT = jnp.pad(featsT, ((0, 0), (0, n_pad - n)))

    def full_spec(arr):
        return pl.BlockSpec(arr.shape, lambda i: (0, 0))

    w1, b1 = params["w1t"], params["b1"]
    w2, b2 = params["w2t"], params["b2"]
    w3, b3 = params["w3t"], params["b3"]
    w4s, b4s = params["w4st"], params["b4s"]
    w4g, b4g = params["w4gt"], params["b4g"]

    kernel = functools.partial(mlp_sdf_kernel, gelu_dtype=_gelu_dtype_for_device())

    out_sdf, out_geom = pl.pallas_call(
        kernel,
        out_shape=(jax.ShapeDtypeStruct((SDF_PAD, n_pad), jnp.float32),
                   jax.ShapeDtypeStruct((GEOM_FEAT_SIZE_OUT, n_pad), jnp.bfloat16)),
        grid_spec=pltpu.PrefetchScalarGridSpec(
            num_scalar_prefetch=0,
            grid=(grid_len,),
            in_specs=[
                pl.BlockSpec((f, tile_n), lambda i: (0, i)),
                full_spec(w1), full_spec(b1),
                full_spec(w2), full_spec(b2),
                full_spec(w3), full_spec(b3),
                full_spec(w4s), full_spec(b4s),
                full_spec(w4g), full_spec(b4g),
            ],
            out_specs=[
                pl.BlockSpec((SDF_PAD, tile_n), lambda i: (0, i)),
                pl.BlockSpec((GEOM_FEAT_SIZE_OUT, tile_n), lambda i: (0, i)),
            ],
        ),
        compiler_params=pltpu.CompilerParams(
            dimension_semantics=("parallel",)),
    )(featsT, w1, b1, w2, b2, w3, b3, w4s, b4s, w4g, b4g)
    return out_sdf[:, :n], out_geom[:, :n]


# ------------------------- encoding / window (JAX glue) ----------------------
def map_range_val(v, in_lo, in_hi, out_lo, out_hi):
    t = jnp.clip((v - in_lo) / (in_hi - in_lo), 0.0, 1.0)
    return out_lo + t * (out_hi - out_lo)


def coarse2fine_window(t, nr_values):
    # cosine easing window over the levels (permutohedral_encoding.Coarse2Fine)
    alpha = t * nr_values
    x = jnp.clip(alpha - jnp.arange(nr_values, dtype=jnp.float32), 0.0, 1.0)
    return 0.5 * (1.0 - jnp.cos(jnp.pi * x))


def permuto_like_encoding(points, tables_lfc, scales, shifts):
    """Hashed nearest-vertex lookup per level (see TODO at top).

    tables_lfc is stored (L, F, CAPACITY) so the single fused gather lands
    directly in the lane-dense (L, F, N) layout -- no transpose pass.  The
    coarse2fine window and concat_points scaling are folded into W1 by the
    caller, so this function is a pure gather + concat.
    Returns the transposed bf16 feature slab (ENC_DIM, N).
    """
    n = points.shape[0]
    primes = jnp.array([1, 2654435761, 805459861], dtype=jnp.uint32)

    # (L, N, 3) lattice coordinates, vectorized over all 24 levels.
    scaled = points[None, :, :] / scales[:, None, None] + shifts[:, None, :]
    # TODO(synk): floor->int32->uint32 wraparound for negative coords is part of
    #   the hashed-lookup approximation; the reference permutohedral hash differs.
    coords = jnp.floor(scaled).astype(jnp.int32).astype(jnp.uint32)
    h = coords[..., 0] * primes[0]
    for d in range(1, IN_CHANNELS):
        h = h ^ (coords[..., d] * primes[d])
    idx = (h & jnp.uint32(CAPACITY - 1)).astype(jnp.int32)            # (L, N)

    # Single fused gather over all levels/features: result is already (L, F, N).
    gathered = tables_lfc[jnp.arange(NR_LEVELS, dtype=jnp.int32)[:, None, None],
                          jnp.arange(NR_FEAT_PER_LEVEL, dtype=jnp.int32)[None, :, None],
                          idx[:, None, :]]                            # (L, F, N)
    feats_levels = gathered.reshape(NR_LEVELS * NR_FEAT_PER_LEVEL, n)  # pure reshape
    featsT = jnp.concatenate([feats_levels, points.T], axis=0)        # (51, N) f32
    return featsT.astype(jnp.bfloat16)


# --------------------------------- SDF model ---------------------------------
def init_sdf_params(key):
    ks = jax.random.split(key, 8)
    # hash tables (permuto init: small uniform), stored (L, F, CAPACITY).
    tables = jax.random.uniform(
        ks[0], (NR_LEVELS, NR_FEAT_PER_LEVEL, CAPACITY),
        minval=-1e-4, maxval=1e-4, dtype=jnp.float32)
    shifts = jax.random.uniform(
        ks[1], (NR_LEVELS, IN_CHANNELS), minval=0.0, maxval=10.0,
        dtype=jnp.float32)
    scales = jnp.asarray(np.geomspace(1.0, 1e-4, NR_LEVELS), dtype=jnp.float32)

    # MLP: Linear(51,32) GELU Linear(32,32) GELU Linear(32,32) GELU Linear(32,33)
    # Weights are stored transposed (out_features, in_features) and in bf16 so
    # the HBM stream feeding the kernel is bf16 (f32 MXU accumulation).
    def kaiming_t(k, fan_in, fan_out, gain):
        w = (gain / math.sqrt(fan_in)) * jax.random.normal(
            k, (fan_out, fan_in), dtype=jnp.float32)
        return w.astype(jnp.bfloat16)

    w4_full = kaiming_t(ks[5], HIDDEN, OUT_DIM, 1.0)                  # (33, 32)
    # sdf head: row 0 real, rows 1..7 zero padding -> (8, 32)
    w4st = jnp.zeros((SDF_PAD, HIDDEN), jnp.bfloat16).at[0].set(w4_full[0])
    b4s = jnp.zeros((SDF_PAD, 1), jnp.float32).at[0, 0].set(SDF_SHIFT)
    # geom head: rows 1..32 -> (32, 32); reference adds sdf_shift to the FULL
    # last-layer bias (sdf + geom_feat), so geom biases get the shift too.
    w4gt = w4_full[1:1 + GEOM_FEAT_SIZE_OUT]
    b4g = jnp.full((GEOM_FEAT_SIZE_OUT, 1), SDF_SHIFT, jnp.float32)

    params = {
        "w1t": kaiming_t(ks[2], ENC_DIM, HIDDEN, math.sqrt(2.0)),     # (32, 51)
        "b1": jnp.zeros((HIDDEN, 1), jnp.float32),
        "w2t": kaiming_t(ks[3], HIDDEN, HIDDEN, math.sqrt(2.0)),      # (32, 32)
        "b2": jnp.zeros((HIDDEN, 1), jnp.float32),
        "w3t": kaiming_t(ks[4], HIDDEN, HIDDEN, math.sqrt(2.0)),      # (32, 32)
        "b3": jnp.zeros((HIDDEN, 1), jnp.float32),
        "w4st": w4st, "b4s": b4s,
        "w4gt": w4gt, "b4g": b4g,
    }
    return params, tables, shifts, scales


def sdf_forward(points, iter_nr, params, tables, shifts, scales):
    assert points.shape[1] == IN_CHANNELS, "points should be N x in_channels"
    t = map_range_val(jnp.asarray(iter_nr, dtype=jnp.float32),
                      0.0, float(NR_ITERS_FOR_C2F), 0.3, 1.0)
    window = coarse2fine_window(t, NR_LEVELS)

    # Encoding: fused gather, already lane-dense & bf16.
    featsT = permuto_like_encoding(points, tables, scales, shifts)    # (51, N) bf16

    # Fold the c2f window (x2 per level) and concat_points scaling into W1's
    # columns: W1 . diag(col_scale) . feats == W1 . (col_scale * feats).
    col_scale = jnp.concatenate([
        jnp.repeat(window, NR_FEAT_PER_LEVEL),
        jnp.full((IN_CHANNELS,), CONCAT_POINTS_SCALING, jnp.float32)])
    mlp_params = dict(params)
    mlp_params["w1t"] = (params["w1t"].astype(jnp.float32)
                         * col_scale[None, :]).astype(jnp.bfloat16)

    out_sdf_T, out_geom_T = mlp_sdf_pallas(featsT, mlp_params)
    sdf = out_sdf_T[0:1, :].T                                         # (N, 1) f32
    if GEOM_FEAT_SIZE_OUT != 0:
        geom_feat = out_geom_T.T.astype(jnp.float32)                  # (N, 32) f32
    else:
        geom_feat = None
    return sdf, geom_feat


# ------------------------------------ main -----------------------------------
if __name__ == "__main__":
    key = jax.random.PRNGKey(0)
    k_pts, k_params = jax.random.split(key)

    N = 256
    points = jax.random.uniform(
        k_pts, (N, IN_CHANNELS), minval=-1.0, maxval=1.0, dtype=jnp.float32)
    iter_nr = 500.0

    params, tables, shifts, scales = init_sdf_params(k_params)

    fwd = jax.jit(sdf_forward)
    sdf, geom_feat = fwd(points, iter_nr, params, tables, shifts, scales)
    sdf = jax.block_until_ready(sdf)
    geom_feat = jax.block_until_ready(geom_feat)

    assert sdf.shape == (N, 1), sdf.shape
    assert geom_feat.shape == (N, GEOM_FEAT_SIZE_OUT), geom_feat.shape
    assert bool(jnp.all(jnp.isfinite(sdf))) and bool(jnp.all(jnp.isfinite(geom_feat)))

    print("KERNEL_OK")
</pallas_src>

<mosaic_0001>
module attributes {stable_mosaic.version = 11 : i64} {
  func.func @mlp_sdf_kernel(%arg0: i32, %arg1: memref<51x256xbf16, #tpu.memory_space<vmem>>, %arg2: memref<32x51xbf16, #tpu.memory_space<vmem>>, %arg3: memref<32x1xf32, #tpu.memory_space<vmem>>, %arg4: memref<32x32xbf16, #tpu.memory_space<vmem>>, %arg5: memref<32x1xf32, #tpu.memory_space<vmem>>, %arg6: memref<32x32xbf16, #tpu.memory_space<vmem>>, %arg7: memref<32x1xf32, #tpu.memory_space<vmem>>, %arg8: memref<8x32xbf16, #tpu.memory_space<vmem>>, %arg9: memref<8x1xf32, #tpu.memory_space<vmem>>, %arg10: memref<32x32xbf16, #tpu.memory_space<vmem>>, %arg11: memref<32x1xf32, #tpu.memory_space<vmem>>, %arg12: memref<8x256xf32, #tpu.memory_space<vmem>>, %arg13: memref<32x256xbf16, #tpu.memory_space<vmem>>) attributes {dimension_semantics = [#tpu.dimension_semantics<parallel>], iteration_bounds = array<i64: 1>, scalar_prefetch = 0 : i64, scratch_operands = 0 : i64, tpu.core_type = #tpu.core_type<tc>, window_params = [{transform_indices = @transform_0, window_bounds = array<i64: 51, 256>}, {pipeline_mode = #tpu.pipeline_mode<synchronous>, transform_indices = @transform_1, window_bounds = array<i64: 32, 51>}, {pipeline_mode = #tpu.pipeline_mode<synchronous>, transform_indices = @transform_2, window_bounds = array<i64: 32, 1>}, {pipeline_mode = #tpu.pipeline_mode<synchronous>, transform_indices = @transform_3, window_bounds = array<i64: 32, 32>}, {pipeline_mode = #tpu.pipeline_mode<synchronous>, transform_indices = @transform_4, window_bounds = array<i64: 32, 1>}, {pipeline_mode = #tpu.pipeline_mode<synchronous>, transform_indices = @transform_5, window_bounds = array<i64: 32, 32>}, {pipeline_mode = #tpu.pipeline_mode<synchronous>, transform_indices = @transform_6, window_bounds = array<i64: 32, 1>}, {pipeline_mode = #tpu.pipeline_mode<synchronous>, transform_indices = @transform_7, window_bounds = array<i64: 8, 32>}, {pipeline_mode = #tpu.pipeline_mode<synchronous>, transform_indices = @transform_8, window_bounds = array<i64: 8, 1>}, {pipeline_mode = #tpu.pipeline_mode<synchronous>, transform_indices = @transform_9, window_bounds = array<i64: 32, 32>}, {pipeline_mode = #tpu.pipeline_mode<synchronous>, transform_indices = @transform_10, window_bounds = array<i64: 32, 1>}, {transform_indices = @transform_11, window_bounds = array<i64: 8, 256>}, {transform_indices = @transform_12, window_bounds = array<i64: 32, 256>}]} {
    %c0 = arith.constant 0 : index
    %c0_0 = arith.constant 0 : index
    %0 = vector.load %arg1[%c0, %c0_0] : memref<51x256xbf16, #tpu.memory_space<vmem>>, vector<51x256xbf16>
    %c0_1 = arith.constant 0 : index
    %c0_2 = arith.constant 0 : index
    %1 = vector.load %arg2[%c0_1, %c0_2] : memref<32x51xbf16, #tpu.memory_space<vmem>>, vector<32x51xbf16>
    %cst = arith.constant dense<0.000000e+00> : vector<32x256xf32>
    %2 = tpu.matmul %1, %0, %cst {dimension_numbers = #tpu.dot_dimension_numbers<[1], [0], [0], [1], [0, 0, 1, 1], [], []>} : vector<32x51xbf16>, vector<51x256xbf16>, vector<32x256xf32> -> vector<32x256xf32>
    %c0_3 = arith.constant 0 : index
    %c0_4 = arith.constant 0 : index
    %3 = vector.load %arg3[%c0_3, %c0_4] : memref<32x1xf32, #tpu.memory_space<vmem>>, vector<32x1xf32>
    %4 = vector.broadcast %3 : vector<32x1xf32> to vector<32x256xf32>
    %5 = arith.addf %2, %4 : vector<32x256xf32>
    %6 = arith.truncf %5 : vector<32x256xf32> to vector<32x256xbf16>
    %cst_5 = arith.constant 5.000000e-01 : bf16
    %7 = vector.broadcast %cst_5 : bf16 to vector<32x256xbf16>
    %8 = arith.mulf %7, %6 : vector<32x256xbf16>
    %cst_6 = arith.constant 4.467770e-02 : bf16
    %9 = vector.broadcast %cst_6 : bf16 to vector<32x256xbf16>
    %10 = arith.mulf %9, %6 : vector<32x256xbf16>
    %11 = arith.mulf %10, %6 : vector<32x256xbf16>
    %12 = arith.mulf %11, %6 : vector<32x256xbf16>
    %13 = arith.addf %6, %12 : vector<32x256xbf16>
    %cst_7 = arith.constant 7.968750e-01 : bf16
    %14 = vector.broadcast %cst_7 : bf16 to vector<32x256xbf16>
    %15 = arith.mulf %14, %13 : vector<32x256xbf16>
    %16 = math.tanh %15 : vector<32x256xbf16>
    %cst_8 = arith.constant 1.000000e+00 : bf16
    %17 = vector.broadcast %cst_8 : bf16 to vector<32x256xbf16>
    %18 = arith.addf %17, %16 : vector<32x256xbf16>
    %19 = arith.mulf %8, %18 : vector<32x256xbf16>
    %c0_9 = arith.constant 0 : index
    %c0_10 = arith.constant 0 : index
    %20 = vector.load %arg4[%c0_9, %c0_10] : memref<32x32xbf16, #tpu.memory_space<vmem>>, vector<32x32xbf16>
    %cst_11 = arith.constant dense<0.000000e+00> : vector<32x256xf32>
    %21 = tpu.matmul %20, %19, %cst_11 {dimension_numbers = #tpu.dot_dimension_numbers<[1], [0], [0], [1], [0, 0, 1, 1], [], []>} : vector<32x32xbf16>, vector<32x256xbf16>, vector<32x256xf32> -> vector<32x256xf32>
    %c0_12 = arith.constant 0 : index
    %c0_13 = arith.constant 0 : index
    %22 = vector.load %arg5[%c0_12, %c0_13] : memref<32x1xf32, #tpu.memory_space<vmem>>, vector<32x1xf32>
    %23 = vector.broadcast %22 : vector<32x1xf32> to vector<32x256xf32>
    %24 = arith.addf %21, %23 : vector<32x256xf32>
    %25 = arith.truncf %24 : vector<32x256xf32> to vector<32x256xbf16>
    %cst_14 = arith.constant 5.000000e-01 : bf16
    %26 = vector.broadcast %cst_14 : bf16 to vector<32x256xbf16>
    %27 = arith.mulf %26, %25 : vector<32x256xbf16>
    %cst_15 = arith.constant 4.467770e-02 : bf16
    %28 = vector.broadcast %cst_15 : bf16 to vector<32x256xbf16>
    %29 = arith.mulf %28, %25 : vector<32x256xbf16>
    %30 = arith.mulf %29, %25 : vector<32x256xbf16>
    %31 = arith.mulf %30, %25 : vector<32x256xbf16>
    %32 = arith.addf %25, %31 : vector<32x256xbf16>
    %cst_16 = arith.constant 7.968750e-01 : bf16
    %33 = vector.broadcast %cst_16 : bf16 to vector<32x256xbf16>
    %34 = arith.mulf %33, %32 : vector<32x256xbf16>
    %35 = math.tanh %34 : vector<32x256xbf16>
    %cst_17 = arith.constant 1.000000e+00 : bf16
    %36 = vector.broadcast %cst_17 : bf16 to vector<32x256xbf16>
    %37 = arith.addf %36, %35 : vector<32x256xbf16>
    %38 = arith.mulf %27, %37 : vector<32x256xbf16>
    %c0_18 = arith.constant 0 : index
    %c0_19 = arith.constant 0 : index
    %39 = vector.load %arg6[%c0_18, %c0_19] : memref<32x32xbf16, #tpu.memory_space<vmem>>, vector<32x32xbf16>
    %cst_20 = arith.constant dense<0.000000e+00> : vector<32x256xf32>
    %40 = tpu.matmul %39, %38, %cst_20 {dimension_numbers = #tpu.dot_dimension_numbers<[1], [0], [0], [1], [0, 0, 1, 1], [], []>} : vector<32x32xbf16>, vector<32x256xbf16>, vector<32x256xf32> -> vector<32x256xf32>
    %c0_21 = arith.constant 0 : index
    %c0_22 = arith.constant 0 : index
    %41 = vector.load %arg7[%c0_21, %c0_22] : memref<32x1xf32, #tpu.memory_space<vmem>>, vector<32x1xf32>
    %42 = vector.broadcast %41 : vector<32x1xf32> to vector<32x256xf32>
    %43 = arith.addf %40, %42 : vector<32x256xf32>
    %44 = arith.truncf %43 : vector<32x256xf32> to vector<32x256xbf16>
    %cst_23 = arith.constant 5.000000e-01 : bf16
    %45 = vector.broadcast %cst_23 : bf16 to vector<32x256xbf16>
    %46 = arith.mulf %45, %44 : vector<32x256xbf16>
    %cst_24 = arith.constant 4.467770e-02 : bf16
    %47 = vector.broadcast %cst_24 : bf16 to vector<32x256xbf16>
    %48 = arith.mulf %47, %44 : vector<32x256xbf16>
    %49 = arith.mulf %48, %44 : vector<32x256xbf16>
    %50 = arith.mulf %49, %44 : vector<32x256xbf16>
    %51 = arith.addf %44, %50 : vector<32x256xbf16>
    %cst_25 = arith.constant 7.968750e-01 : bf16
    %52 = vector.broadcast %cst_25 : bf16 to vector<32x256xbf16>
    %53 = arith.mulf %52, %51 : vector<32x256xbf16>
    %54 = math.tanh %53 : vector<32x256xbf16>
    %cst_26 = arith.constant 1.000000e+00 : bf16
    %55 = vector.broadcast %cst_26 : bf16 to vector<32x256xbf16>
    %56 = arith.addf %55, %54 : vector<32x256xbf16>
    %57 = arith.mulf %46, %56 : vector<32x256xbf16>
    %c0_27 = arith.constant 0 : index
    %c0_28 = arith.constant 0 : index
    %58 = vector.load %arg8[%c0_27, %c0_28] : memref<8x32xbf16, #tpu.memory_space<vmem>>, vector<8x32xbf16>
    %cst_29 = arith.constant dense<0.000000e+00> : vector<8x256xf32>
    %59 = tpu.matmul %58, %57, %cst_29 {dimension_numbers = #tpu.dot_dimension_numbers<[1], [0], [0], [1], [0, 0, 1, 1], [], []>} : vector<8x32xbf16>, vector<32x256xbf16>, vector<8x256xf32> -> vector<8x256xf32>
    %c0_30 = arith.constant 0 : index
    %c0_31 = arith.constant 0 : index
    %60 = vector.load %arg9[%c0_30, %c0_31] : memref<8x1xf32, #tpu.memory_space<vmem>>, vector<8x1xf32>
    %61 = vector.broadcast %60 : vector<8x1xf32> to vector<8x256xf32>
    %62 = arith.addf %59, %61 : vector<8x256xf32>
    %c0_32 = arith.constant 0 : index
    %c0_33 = arith.constant 0 : index
    %63 = vector.load %arg12[%c0_32, %c0_33] : memref<8x256xf32, #tpu.memory_space<vmem>>, vector<8x256xf32>
    tpu.vector_store %arg12[%c0_32, %c0_33], %62 {strides = array<i32>} : memref<8x256xf32, #tpu.memory_space<vmem>>, vector<8x256xf32>,
    %c0_34 = arith.constant 0 : index
    %c0_35 = arith.constant 0 : index
    %64 = vector.load %arg10[%c0_34, %c0_35] : memref<32x32xbf16, #tpu.memory_space<vmem>>, vector<32x32xbf16>
    %cst_36 = arith.constant dense<0.000000e+00> : vector<32x256xf32>
    %65 = tpu.matmul %64, %57, %cst_36 {dimension_numbers = #tpu.dot_dimension_numbers<[1], [0], [0], [1], [0, 0, 1, 1], [], []>} : vector<32x32xbf16>, vector<32x256xbf16>, vector<32x256xf32> -> vector<32x256xf32>
    %c0_37 = arith.constant 0 : index
    %c0_38 = arith.constant 0 : index
    %66 = vector.load %arg11[%c0_37, %c0_38] : memref<32x1xf32, #tpu.memory_space<vmem>>, vector<32x1xf32>
    %67 = vector.broadcast %66 : vector<32x1xf32> to vector<32x256xf32>
    %68 = arith.addf %65, %67 : vector<32x256xf32>
    %69 = arith.truncf %68 : vector<32x256xf32> to vector<32x256xbf16>
    %c0_39 = arith.constant 0 : index
    %c0_40 = arith.constant 0 : index
    %70 = vector.load %arg13[%c0_39, %c0_40] : memref<32x256xbf16, #tpu.memory_space<vmem>>, vector<32x256xbf16>
    tpu.vector_store %arg13[%c0_39, %c0_40], %69 {strides = array<i32>} : memref<32x256xbf16, #tpu.memory_space<vmem>>, vector<32x256xbf16>,
    return
  }
  func.func @transform_0(%arg0: i32) -> (i32, i32) {
    %c0_i32 = arith.constant 0 : i32
    %c0_i32_0 = arith.constant 0 : i32
    return %c0_i32, %arg0 : i32, i32
  }
  func.func @transform_1(%arg0: i32) -> (i32, i32) {
    %c0_i32 = arith.constant 0 : i32
    %c0_i32_0 = arith.constant 0 : i32
    %c0_i32_1 = arith.constant 0 : i32
    return %c0_i32, %c0_i32_0 : i32, i32
  }
  func.func @transform_2(%arg0: i32) -> (i32, i32) {
    %c0_i32 = arith.constant 0 : i32
    %c0_i32_0 = arith.constant 0 : i32
    %c0_i32_1 = arith.constant 0 : i32
    return %c0_i32, %c0_i32_0 : i32, i32
  }
  func.func @transform_3(%arg0: i32) -> (i32, i32) {
    %c0_i32 = arith.constant 0 : i32
    %c0_i32_0 = arith.constant 0 : i32
    %c0_i32_1 = arith.constant 0 : i32
    return %c0_i32, %c0_i32_0 : i32, i32
  }
  func.func @transform_4(%arg0: i32) -> (i32, i32) {
    %c0_i32 = arith.constant 0 : i32
    %c0_i32_0 = arith.constant 0 : i32
    %c0_i32_1 = arith.constant 0 : i32
    return %c0_i32, %c0_i32_0 : i32, i32
  }
  func.func @transform_5(%arg0: i32) -> (i32, i32) {
    %c0_i32 = arith.constant 0 : i32
    %c0_i32_0 = arith.constant 0 : i32
    %c0_i32_1 = arith.constant 0 : i32
    return %c0_i32, %c0_i32_0 : i32, i32
  }
  func.func @transform_6(%arg0: i32) -> (i32, i32) {
    %c0_i32 = arith.constant 0 : i32
    %c0_i32_0 = arith.constant 0 : i32
    %c0_i32_1 = arith.constant 0 : i32
    return %c0_i32, %c0_i32_0 : i32, i32
  }
  func.func @transform_7(%arg0: i32) -> (i32, i32) {
    %c0_i32 = arith.constant 0 : i32
    %c0_i32_0 = arith.constant 0 : i32
    %c0_i32_1 = arith.constant 0 : i32
    return %c0_i32, %c0_i32_0 : i32, i32
  }
  func.func @transform_8(%arg0: i32) -> (i32, i32) {
    %c0_i32 = arith.constant 0 : i32
    %c0_i32_0 = arith.constant 0 : i32
    %c0_i32_1 = arith.constant 0 : i32
    return %c0_i32, %c0_i32_0 : i32, i32
  }
  func.func @transform_9(%arg0: i32) -> (i32, i32) {
    %c0_i32 = arith.constant 0 : i32
    %c0_i32_0 = arith.constant 0 : i32
    %c0_i32_1 = arith.constant 0 : i32
    return %c0_i32, %c0_i32_0 : i32, i32
  }
  func.func @transform_10(%arg0: i32) -> (i32, i32) {
    %c0_i32 = arith.constant 0 : i32
    %c0_i32_0 = arith.constant 0 : i32
    %c0_i32_1 = arith.constant 0 : i32
    return %c0_i32, %c0_i32_0 : i32, i32
  }
  func.func @transform_11(%arg0: i32) -> (i32, i32) {
    %c0_i32 = arith.constant 0 : i32
    %c0_i32_0 = arith.constant 0 : i32
    return %c0_i32, %arg0 : i32, i32
  }
  func.func @transform_12(%arg0: i32) -> (i32, i32) {
    %c0_i32 = arith.constant 0 : i32
    %c0_i32_0 = arith.constant 0 : i32
    return %c0_i32, %arg0 : i32, i32
  }
}

</mosaic_0001>

<bundles_post_ra>
// kernel: sdf_forward.1
= control target key start
LH: loop header
LB: loop body
LE: loop exit
PB: predicated region body
PF: predicated region fallthrough
CT: control target
= control target key end

     0   :  { %vm128_vm0 = vcmask 1040384   ;;  %vm129_vm1 = vcmask 1041408   ;;  %v1170_v1 = vmov 65535   ;;  %v1171_v3 = vmov 0   ;;  %s1558_s0 = inlined_call_operand.vmem [shape: bf16[51,256], index: 0, kind: input, shape index: {}]   ;;  %s1559_s2 = inlined_call_operand.vmem [shape: f32[32,1], index: 2, kind: input, shape index: {}]   ;;  %s1560_s4 = inlined_call_operand.vmem [shape: f32[32,1], index: 4, kind: input, shape index: {}]   ;;  %s1561_s1 = inlined_call_operand.vmem [shape: bf16[32,51], index: 1, kind: input, shape index: {}]   ;;  %s1562_s6 = inlined_call_operand.vmem [shape: f32[32,1], index: 6, kind: input, shape index: {}]   ;;  %s1563_s10 = inlined_call_operand.vmem [shape: f32[32,1], index: 10, kind: input, shape index: {}]   ;;  %s1564_s8 = inlined_call_operand.vmem [shape: f32[8,1], index: 8, kind: input, shape index: {}]   ;;  %s1565_s3 = inlined_call_operand.vmem [shape: bf16[32,32], index: 3, kind: input, shape index: {}]   ;;  %s1566_s5 = inlined_call_operand.vmem [shape: bf16[32,32], index: 5, kind: input, shape index: {}]   ;;  %s1567_s7 = inlined_call_operand.vmem [shape: bf16[8,32], index: 7, kind: input, shape index: {}]   ;;  %s1568_s9 = inlined_call_operand.vmem [shape: bf16[32,32], index: 9, kind: input, shape index: {}]   ;;  %s1569_s12 = inlined_call_operand.vmem [shape: bf16[32,256], index: 12, kind: output, shape index: {1}]   ;;  %s1570_s11 = inlined_call_operand.vmem [shape: f32[8,256], index: 11, kind: output, shape index: {0}]  }
   0x1   :  { %v47_v0 = vld [vmem:[%s1558_s0 + $0x30] sm:$0x33]  ;;  %v130_v2 = vsel %vm128_vm0, 4294967295, %v1170_v1  ;;  %1119 = vset.pattern.permute.xlu0 %v1171_v3  ;;  %1120 = vset.pattern.permute.xlu1 %v1171_v3  ;;  %v52_v7 = vld [vmem:[%s1559_s2] sm:$0xff]  ;;  %v1108_v12 = vld [vmem:[%s1558_s0 + $0x24] sm:$0xf0] }
   0x2   :  { %v54_v4 = vld [vmem:[%s1559_s2 + $0x10] sm:$0xff]  ;;  %v105_v5 = vunpack.c.l.b16 %v47_v0  ;;  %v106_v6 = vunpack.c.h.b16 %v47_v0  ;;  %1121 = vset.pattern.permute.xlu2 %v1171_v3  ;;  %v131_v8 = vsel %vm129_vm1, %v130_v2, 0  ;;  %58 = vperm.xlu1 %1120, %v52_v7   ;;  %v1055_v11 = vld [vmem:[%s1558_s0 + $0x20] sm:$0xf]  ;;  %v1107_v13 = vld [vmem:[%s1558_s0 + $0x24] sm:$0xf] }
   0x3   :  { %68 = vperm.xlu0 %1119, %v54_v4   ;;  %v1057_v14 = vld [vmem:[%s1558_s0 + $0x28] sm:$0xf0]  ;;  %v55_v17 = vld [vmem:[%s1559_s2 + $0x18] sm:$0xff]  ;;  %v1056_v18 = vor.u32 %v1108_v12, %v1055_v11  ;;  %v1047_v20 = vld [vmem:[%s1558_s0 + $0x10] sm:$0xf]  ;;  %vm121_vm2 = vcmask 416768  }
   0x4   :  { %v113_v9 = vpack.c.b16 %v105_v5, %v105_v5  ;;  %v114_v10 = vpack.c.b16 %v106_v6, %v106_v6  ;;  %v1060_v19 = vor.u32 %v1107_v13, %v1057_v14  ;;  %v53_v21 = vld [vmem:[%s1559_s2 + $0x8] sm:$0xff]  ;;  %v1106_v22 = vld [vmem:[%s1558_s0 + $0x14] sm:$0xf0]  ;;  %v1105_v23 = vld [vmem:[%s1558_s0 + $0x14] sm:$0xf]  ;;  %vm398_vm3 = vcmask 261120  }
   0x5   :  { %v1049_v24 = vld [vmem:[%s1558_s0 + $0x18] sm:$0xf0]  ;;  %v1048_v25 = vor.u32 %v1106_v22, %v1047_v20  ;;  %v1039_v27 = vld [vmem:[%s1558_s0] sm:$0xf]  ;;  %v1104_v28 = vld [vmem:[%s1558_s0 + $0x4] sm:$0xf0] }
   0x6   :  { %v133_v15 = vand.u32 %v131_v8, %v113_v9  ;;  %v136_v16 = vand.u32 %v131_v8, %v114_v10  ;;  %v1052_v26 = vor.u32 %v1105_v23, %v1049_v24  ;;  %v1103_v29 = vld [vmem:[%s1558_s0 + $0x4] sm:$0xf]  ;;  %v1041_v30 = vld [vmem:[%s1558_s0 + $0x8] sm:$0xf0]  ;;  %v1040_v32 = vor.u32 %v1104_v28, %v1039_v27  ;;  %v634_v36 = vld [vmem:[%s1562_s6 + $0x18] sm:$0xff] }
   0x7   :  { %v364_v31 = vld [vmem:[%s1560_s4] sm:$0xff]  ;;  %v1044_v33 = vor.u32 %v1103_v29, %v1041_v30  ;;  %v365_v34 = vld [vmem:[%s1560_s4 + $0x8] sm:$0xff]  ;;  %v938_v41 = vld [vmem:[%s1563_s10 + $0x18] sm:$0xff] }
   0x8   :  { %142 = vmatpush.bf16.msra.mxu0 %v133_v15  ;;  %161 = vmatpush.bf16.msra.mxu1 %v136_v16  ;;  %v1109_v35 = vld [vmem:[%s1561_s1] sm:$0xff]  ;;  %v936_v39 = vld [vmem:[%s1563_s10 + $0x8] sm:$0xff] }
   0x9   :  { %v631_v37 = vld [vmem:[%s1562_s6] sm:$0xff]  ;;  %v1110_v40 = vld [vmem:[%s1561_s1 + $0x8] sm:$0xff] }
   0xa   :  { %63 = vperm.xlu1 %1120, %v53_v21   ;;  %v935_v38 = vld [vmem:[%s1563_s10] sm:$0xff] }
   0xb   :  { %73 = vperm.xlu0 %1119, %v55_v17   ;;  %v894_v42 = vld [vmem:[%s1564_s8] sm:$0xff] }
   0xc   :  { %143 = vmatpush.bf16.msra.mxu0 %v1056_v18  ;;  %162 = vmatpush.bf16.msra.mxu1 %v1060_v19 }
  0x10   :  { %144 = vmatpush.bf16.msra.mxu0 %v1048_v25  ;;  %163 = vmatpush.bf16.msra.mxu1 %v1052_v26 }
  0x12   :  { %375 = vperm.xlu1 %1120, %v365_v34  }
  0x13   :  { %370 = vperm.xlu0 %1119, %v364_v31  }
  0x14   :  { %145 = vmatpush.bf16.msra.mxu0 %v1040_v32  ;;  %164 = vmatpush.bf16.msra.mxu1 %v1044_v33 }
  0x17   :  { %1061 = vmatmul.msk.bf16.vlgmr.msra.gmra.mxu0 %vm121_vm2, %v1109_v35  ;;  %1063 = vmatmul.msk.bf16.vlgmr.msra.gmra.mxu1 %vm121_vm2, %v1109_v35 }
  0x1a   :  { %637 = vperm.xlu1 %1120, %v631_v37  }
  0x1b   :  { %652 = vperm.xlu0 %1119, %v634_v36  }
  0x22   :  { %946 = vperm.xlu1 %1120, %v936_v39  }
  0x23   :  { %941 = vperm.xlu0 %1119, %v935_v38  }
  0x27   :  { %1062 = vmatmul.msk.bf16.gmra.mxu0 %vm121_vm2, %v1110_v40  ;;  %1064 = vmatmul.msk.bf16.gmra.mxu1 %vm121_vm2, %v1110_v40 }
  0x2a   :  { %897 = vperm.xlu1 %1120, %v894_v42  }
  0x2b   :  { %956 = vperm.xlu0 %1119, %v938_v41  }
  0x74   :  { %v59_v43 = vpop.permute.xlu1 %58 }
  0x75   :  { %v69_v2 = vpop.permute.xlu0 %68 }
  0x7c   :  { %v64_v51 = vpop.permute.xlu1 %63 }
  0x7d   :  { %v74_v30 = vpop.permute.xlu0 %73 }
  0x94   :  { %v147_v44 = vpop.f32.mrf.mxu0  ;;  %v166_v45 = vpop.f32.mrf.mxu1 }
  0x95   :  { %v148_v46 = vadd.f32 %v147_v44, %v59_v43  ;;  %v167_v47 = vadd.f32 %v166_v45, %v59_v43 }
  0x97   :  { %v176_v48 = vpack.c.bf16 %v167_v47, %v148_v46 }
  0x99   :  { %v1322_v49 = vunpack.c.l.bf16 %v176_v48  ;;  %v1324_v50 = vunpack.c.h.bf16 %v176_v48 }
  0x9b   :  { %v200_v52 = vmul.f32 0.044677734, %v1322_v49  ;;  %v201_v53 = vmul.f32 0.044677734, %v1324_v50 }
  0x9c   :  { %v149_v54 = vpop.f32.mrf.mxu0  ;;  %v168_v55 = vpop.f32.mrf.mxu1 }
  0x9d   :  { %v208_v56 = vpack.c.bf16 %v201_v53, %v200_v52  ;;  %v150_v57 = vadd.f32 %v149_v54, %v64_v51  ;;  %v169_v58 = vadd.f32 %v168_v55, %v64_v51 }
  0x9f   :  { %v212_v59 = vunpack.c.l.bf16 %v208_v56  ;;  %v213_v60 = vunpack.c.h.bf16 %v208_v56  ;;  %v177_v61 = vpack.c.bf16 %v169_v58, %v150_v57 }
  0xa1   :  { %v220_v62 = vmul.f32 %v212_v59, %v1322_v49  ;;  %v221_v63 = vmul.f32 %v213_v60, %v1324_v50  ;;  %v1330_v0 = vunpack.c.l.bf16 %v177_v61  ;;  %v1332_v1 = vunpack.c.h.bf16 %v177_v61 }
  0xa3   :  { %v228_v3 = vpack.c.bf16 %v221_v63, %v220_v62  ;;  %v202_v4 = vmul.f32 0.044677734, %v1330_v0  ;;  %v203_v5 = vmul.f32 0.044677734, %v1332_v1 }
  0xa4   :  { %v152_v6 = vpop.f32.mrf.mxu0  ;;  %v171_v7 = vpop.f32.mrf.mxu1 }
  0xa5   :  { %v232_v8 = vunpack.c.l.bf16 %v228_v3  ;;  %v233_v9 = vunpack.c.h.bf16 %v228_v3  ;;  %v209_v10 = vpack.c.bf16 %v203_v5, %v202_v4  ;;  %v153_v11 = vadd.f32 %v152_v6, %v69_v2 }
  0xa6   :  { %v172_v12 = vadd.f32 %v171_v7, %v69_v2 }
  0xa7   :  { %v240_v13 = vmul.f32 %v232_v8, %v1322_v49  ;;  %v241_v14 = vmul.f32 %v233_v9, %v1324_v50  ;;  %v214_v15 = vunpack.c.l.bf16 %v209_v10  ;;  %v215_v16 = vunpack.c.h.bf16 %v209_v10 }
  0xa8   :  { %v178_v17 = vpack.c.bf16 %v172_v12, %v153_v11 }
  0xa9   :  { %v248_v18 = vpack.c.bf16 %v241_v14, %v240_v13  ;;  %v222_v19 = vmul.f32 %v214_v15, %v1330_v0  ;;  %v223_v20 = vmul.f32 %v215_v16, %v1332_v1 }
  0xaa   :  { %v1340_v21 = vunpack.c.l.bf16 %v178_v17  ;;  %v1342_v22 = vunpack.c.h.bf16 %v178_v17 }
  0xab   :  { %v252_v23 = vunpack.c.l.bf16 %v248_v18  ;;  %v253_v24 = vunpack.c.h.bf16 %v248_v18  ;;  %v229_v25 = vpack.c.bf16 %v223_v20, %v222_v19 }
  0xac   :  { %v204_v26 = vmul.f32 0.044677734, %v1340_v21  ;;  %v205_v27 = vmul.f32 0.044677734, %v1342_v22  ;;  %v154_v28 = vpop.f32.mrf.mxu0  ;;  %v173_v29 = vpop.f32.mrf.mxu1 }
  0xad   :  { %v260_v31 = vadd.f32 %v252_v23, %v1322_v49  ;;  %v261_v32 = vadd.f32 %v253_v24, %v1324_v50  ;;  %v234_v33 = vunpack.c.l.bf16 %v229_v25  ;;  %v235_v34 = vunpack.c.h.bf16 %v229_v25 }
  0xae   :  { %v210_v35 = vpack.c.bf16 %v205_v27, %v204_v26  ;;  %v155_v36 = vadd.f32 %v154_v28, %v74_v30  ;;  %v174_v37 = vadd.f32 %v173_v29, %v74_v30 }
  0xaf   :  { %v242_v38 = vmul.f32 %v234_v33, %v1330_v0  ;;  %v243_v39 = vmul.f32 %v235_v34, %v1332_v1  ;;  %v268_v43 = vpack.c.bf16 %v261_v32, %v260_v31 }
  0xb0   :  { %v216_v40 = vunpack.c.l.bf16 %v210_v35  ;;  %v217_v41 = vunpack.c.h.bf16 %v210_v35  ;;  %v179_v42 = vpack.c.bf16 %v174_v37, %v155_v36 }
  0xb1   :  { %v249_v44 = vpack.c.bf16 %v243_v39, %v242_v38  ;;  %v272_v56 = vunpack.c.l.bf16 %v268_v43  ;;  %v273_v57 = vunpack.c.h.bf16 %v268_v43 }
  0xb2   :  { %v224_v45 = vmul.f32 %v216_v40, %v1340_v21  ;;  %v225_v46 = vmul.f32 %v217_v41, %v1342_v22  ;;  %v1352_v47 = vunpack.c.l.bf16 %v179_v42  ;;  %v1354_v48 = vunpack.c.h.bf16 %v179_v42 }
  0xb3   :  { %v254_v51 = vunpack.c.l.bf16 %v249_v44  ;;  %v255_v52 = vunpack.c.h.bf16 %v249_v44  ;;  %v280_v6 = vmul.f32 0.796875, %v272_v56  ;;  %v281_v7 = vmul.f32 0.796875, %v273_v57 }
  0xb4   :  { %v230_v53 = vpack.c.bf16 %v225_v46, %v224_v45  ;;  %v206_v54 = vmul.f32 0.044677734, %v1352_v47  ;;  %v207_v55 = vmul.f32 0.044677734, %v1354_v48 }
  0xb5   :  { %v262_v58 = vadd.f32 %v254_v51, %v1330_v0  ;;  %v263_v59 = vadd.f32 %v255_v52, %v1332_v1  ;;  %v288_v18 = vpack.c.bf16 %v281_v7, %v280_v6 }
  0xb6   :  { %v236_v60 = vunpack.c.l.bf16 %v230_v53  ;;  %v237_v61 = vunpack.c.h.bf16 %v230_v53  ;;  %v211_v62 = vpack.c.bf16 %v207_v55, %v206_v54 }
  0xb7   :  { %v269_v63 = vpack.c.bf16 %v263_v59, %v262_v58  ;;  %v292_v32 = vunpack.c.l.bf16 %v288_v18  ;;  %v293_v33 = vunpack.c.h.bf16 %v288_v18 }
  0xb8   :  { %v244_v2 = vmul.f32 %v236_v60, %v1340_v21  ;;  %v245_v3 = vmul.f32 %v237_v61, %v1342_v22  ;;  %v218_v4 = vunpack.c.l.bf16 %v211_v62  ;;  %v219_v5 = vunpack.c.h.bf16 %v211_v62 }
  0xb9   :  { %v274_v8 = vunpack.c.l.bf16 %v269_v63  ;;  %v275_v9 = vunpack.c.h.bf16 %v269_v63  ;;  %1122 = vtanh.f32 %v292_v32 }
  0xba   :  { %v250_v10 = vpack.c.bf16 %v245_v3, %v244_v2  ;;  %v226_v11 = vmul.f32 %v218_v4, %v1352_v47  ;;  %v227_v12 = vmul.f32 %v219_v5, %v1354_v48  ;;  %1124 = vtanh.f32 %v293_v33 }
  0xbb   :  { %v282_v13 = vmul.f32 0.796875, %v274_v8  ;;  %v283_v14 = vmul.f32 0.796875, %v275_v9 }
  0xbc   :  { %v256_v15 = vunpack.c.l.bf16 %v250_v10  ;;  %v257_v16 = vunpack.c.h.bf16 %v250_v10  ;;  %v231_v17 = vpack.c.bf16 %v227_v12, %v226_v11 }
  0xbd   :  { %v289_v25 = vpack.c.bf16 %v283_v14, %v282_v13  ;;  %v192_v14 = vmul.f32 0.5, %v1340_v21 }
  0xbe   :  { %v264_v19 = vadd.f32 %v256_v15, %v1340_v21  ;;  %v265_v20 = vadd.f32 %v257_v16, %v1342_v22  ;;  %v238_v23 = vunpack.c.l.bf16 %v231_v17  ;;  %v239_v24 = vunpack.c.h.bf16 %v231_v17 }
  0xbf   :  { %v294_v34 = vunpack.c.l.bf16 %v289_v25  ;;  %v295_v39 = vunpack.c.h.bf16 %v289_v25  ;;  %v1123_v52 = vpop.eup %1122  ;;  %v193_v15 = vmul.f32 0.5, %v1342_v22  ;;  %v194_v16 = vmul.f32 0.5, %v1352_v47 }
  0xc0   :  { %v270_v26 = vpack.c.bf16 %v265_v20, %v264_v19  ;;  %v246_v27 = vmul.f32 %v238_v23, %v1352_v47  ;;  %v247_v28 = vmul.f32 %v239_v24, %v1354_v48  ;;  %v1125_v55 = vpop.eup %1124  ;;  %v195_v17 = vmul.f32 0.5, %v1354_v48 }
  0xc1   :  { %1126 = vtanh.f32 %v294_v34  ;;  %v308_v3 = vpack.c.bf16 %v1125_v55, %v1123_v52  ;;  %v188_v19 = vmul.f32 0.5, %v1322_v49  ;;  %v190_v24 = vmul.f32 0.5, %v1330_v0  ;;  %v366_v0 = vld [vmem:[%s1560_s4 + $0x10] sm:$0xff] }
  0xc2   :  { %v276_v29 = vunpack.c.l.bf16 %v270_v26  ;;  %v277_v30 = vunpack.c.h.bf16 %v270_v26  ;;  %v251_v31 = vpack.c.bf16 %v247_v28, %v246_v27  ;;  %1128 = vtanh.f32 %v295_v39  ;;  %380 = vperm.xlu2 %1121, %v366_v0  }
  0xc3   :  { %v312_v8 = vunpack.c.l.bf16 %v308_v3  ;;  %v313_v9 = vunpack.c.h.bf16 %v308_v3  ;;  %v191_v25 = vmul.f32 0.5, %v1332_v1  ;;  %v189_v22 = vmul.f32 0.5, %v1324_v50 }
  0xc4   :  { %v284_v35 = vmul.f32 0.796875, %v276_v29  ;;  %v285_v36 = vmul.f32 0.796875, %v277_v30  ;;  %v258_v37 = vunpack.c.l.bf16 %v251_v31  ;;  %v259_v38 = vunpack.c.h.bf16 %v251_v31 }
  0xc5   :  { %v320_v26 = vadd.f32 1.0, %v312_v8  ;;  %v321_v27 = vadd.f32 1.0, %v313_v9  ;;  %v198_v30 = vpack.c.bf16 %v193_v15, %v192_v14  ;;  %v197_v33 = vpack.c.bf16 %v191_v25, %v190_v24  ;;  %v1112_v8 = vld [vmem:[%s1565_s3 + $0x8] sm:$0xff]  ;;  %v937_v9 = vld [vmem:[%s1563_s10 + $0x10] sm:$0xff] }
  0xc6   :  { %v266_v40 = vadd.f32 %v258_v37, %v1352_v47  ;;  %v267_v41 = vadd.f32 %v259_v38, %v1354_v48  ;;  %v290_v42 = vpack.c.bf16 %v285_v36, %v284_v35  ;;  %v199_v47 = vpack.c.bf16 %v195_v17, %v194_v16 }
  0xc7   :  { %v1127_v56 = vpop.eup %1126  ;;  %v328_v49 = vpack.c.bf16 %v321_v27, %v320_v26  ;;  %v196_v36 = vpack.c.bf16 %v189_v22, %v188_v19  ;;  %v336_v37 = vunpack.c.l.bf16 %v198_v30  ;;  %v337_v39 = vunpack.c.h.bf16 %v198_v30 }
  0xc8   :  { %v271_v43 = vpack.c.bf16 %v267_v41, %v266_v40  ;;  %v296_v44 = vunpack.c.l.bf16 %v290_v42  ;;  %v297_v45 = vunpack.c.h.bf16 %v290_v42  ;;  %v1129_v58 = vpop.eup %1128  ;;  %v338_v38 = vunpack.c.l.bf16 %v199_v47 }
  0xc9   :  { %v309_v2 = vpack.c.bf16 %v1129_v58, %v1127_v56  ;;  %v339_v50 = vunpack.c.h.bf16 %v199_v47  ;;  %v332_v56 = vunpack.c.l.bf16 %v196_v36 }
  0xca   :  { %v278_v46 = vunpack.c.l.bf16 %v271_v43  ;;  %v279_v51 = vunpack.c.h.bf16 %v271_v43  ;;  %1130 = vtanh.f32 %v296_v44  ;;  %v334_v44 = vunpack.c.l.bf16 %v197_v33 }
  0xcb   :  { %1132 = vtanh.f32 %v297_v45  ;;  %v314_v6 = vunpack.c.l.bf16 %v309_v2  ;;  %v315_v7 = vunpack.c.h.bf16 %v309_v2  ;;  %v340_v45 = vunpack.c.l.bf16 %v328_v49 }
  0xcc   :  { %v286_v53 = vmul.f32 0.796875, %v278_v46  ;;  %v287_v54 = vmul.f32 0.796875, %v279_v51  ;;  %v335_v46 = vunpack.c.h.bf16 %v197_v33  ;;  %v341_v51 = vunpack.c.h.bf16 %v328_v49 }
  0xcd   :  { %v322_v20 = vadd.f32 1.0, %v314_v6  ;;  %v323_v23 = vadd.f32 1.0, %v315_v7  ;;  %v633_v6 = vld [vmem:[%s1562_s6 + $0x10] sm:$0xff]  ;;  %v632_v7 = vld [vmem:[%s1562_s6 + $0x8] sm:$0xff] }
  0xce   :  { %v291_v57 = vpack.c.bf16 %v287_v54, %v286_v53 }
  0xcf   :  { %v329_v32 = vpack.c.bf16 %v323_v23, %v322_v20 }
  0xd0   :  { %v1131_v59 = vpop.eup %1130  ;;  %v298_v60 = vunpack.c.l.bf16 %v291_v57  ;;  %v299_v61 = vunpack.c.h.bf16 %v291_v57  ;;  %v333_v57 = vunpack.c.h.bf16 %v196_v36 }
  0xd1   :  { %v1133_v62 = vpop.eup %1132  ;;  %v342_v42 = vunpack.c.l.bf16 %v329_v32  ;;  %v343_v43 = vunpack.c.h.bf16 %v329_v32 }
  0xd2   :  { %1134 = vtanh.f32 %v298_v60  ;;  %v310_v63 = vpack.c.bf16 %v1133_v62, %v1131_v59  ;;  %v367_v62 = vld [vmem:[%s1560_s4 + $0x18] sm:$0xff]  ;;  %v349_v2 = vmul.f32 %v341_v51, %v333_v57 }
  0xd3   :  { %1136 = vtanh.f32 %v299_v61  ;;  %v350_v60 = vmul.f32 %v342_v42, %v334_v44  ;;  %v351_v61 = vmul.f32 %v343_v43, %v335_v46  ;;  %385 = vperm.xlu2 %1121, %v367_v62  }
  0xd4   :  { %v316_v4 = vunpack.c.l.bf16 %v310_v63  ;;  %v317_v5 = vunpack.c.h.bf16 %v310_v63  ;;  %v348_v63 = vmul.f32 %v340_v45, %v332_v56 }
  0xd6   :  { %v324_v11 = vadd.f32 1.0, %v316_v4  ;;  %v325_v12 = vadd.f32 1.0, %v317_v5  ;;  %v356_v3 = vpack.c.bf16 %v350_v60, %v348_v63  ;;  %v357_v4 = vpack.c.bf16 %v351_v61, %v349_v2  ;;  %v1111_v5 = vld [vmem:[%s1565_s3] sm:$0xff] }
  0xd8   :  { %v1135_v10 = vpop.eup %1134  ;;  %v330_v21 = vpack.c.bf16 %v325_v12, %v324_v11 }
  0xd9   :  { %v1137_v13 = vpop.eup %1136 }
  0xda   :  { %v311_v18 = vpack.c.bf16 %v1137_v13, %v1135_v10  ;;  %v344_v1 = vunpack.c.l.bf16 %v330_v21  ;;  %v345_v35 = vunpack.c.h.bf16 %v330_v21  ;;  %v371_v10 = vpop.permute.xlu0 %370 }
  0xdb   :  { %647 = vperm.xlu2 %1121, %v633_v6  }
  0xdc   :  { %v318_v28 = vunpack.c.l.bf16 %v311_v18  ;;  %v319_v29 = vunpack.c.h.bf16 %v311_v18  ;;  %v352_v52 = vmul.f32 %v344_v1, %v336_v37  ;;  %v353_v54 = vmul.f32 %v345_v35, %v337_v39  ;;  %v376_v18 = vpop.permute.xlu1 %375 }
  0xde   :  { %v326_v31 = vadd.f32 1.0, %v318_v28  ;;  %v327_v48 = vadd.f32 1.0, %v319_v29 }
  0xe0   :  { %v331_v34 = vpack.c.bf16 %v327_v48, %v326_v31 }
  0xe2   :  { %v346_v40 = vunpack.c.l.bf16 %v331_v34  ;;  %v347_v41 = vunpack.c.h.bf16 %v331_v34 }
  0xe3   :  { %642 = vperm.xlu2 %1121, %v632_v7  }
  0xe4   :  { %v354_v53 = vmul.f32 %v346_v40, %v338_v38  ;;  %v355_v55 = vmul.f32 %v347_v41, %v339_v50 }
  0xe6   :  { %v358_v58 = vpack.c.bf16 %v354_v53, %v352_v52  ;;  %v359_v59 = vpack.c.bf16 %v355_v55, %v353_v54 }
  0xe8   :  { %411 = vmatpush.bf16.msra.mxu2 %v358_v58  ;;  %430 = vmatpush.bf16.msra.mxu3 %v359_v59 }
  0xeb   :  { %951 = vperm.xlu2 %1121, %v937_v9  }
  0xec   :  { %412 = vmatpush.bf16.msra.mxu2 %v356_v3  ;;  %431 = vmatpush.bf16.msra.mxu3 %v357_v4 }
  0xef   :  { %1073 = vmatmul.msk.bf16.vlgmr.msra.gmra.mxu2 %vm398_vm3, %v1111_v5  ;;  %1075 = vmatmul.msk.bf16.vlgmr.msra.gmra.mxu3 %vm398_vm3, %v1111_v5 }
  0xff   :  { %1074 = vmatmul.msk.bf16.gmra.mxu2 %vm398_vm3, %v1112_v8  ;;  %1076 = vmatmul.msk.bf16.gmra.mxu3 %vm398_vm3, %v1112_v8 }
 0x11c   :  { %v381_v48 = vpop.permute.xlu2 %380 }
 0x12d   :  { %v386_v59 = vpop.permute.xlu2 %385 }
 0x172   :  { %v414_v11 = vpop.f32.mrf.mxu2  ;;  %v433_v12 = vpop.f32.mrf.mxu3 }
 0x173   :  { %v415_v13 = vadd.f32 %v414_v11, %v371_v10  ;;  %v434_v14 = vadd.f32 %v433_v12, %v371_v10 }
 0x175   :  { %v443_v15 = vpack.c.bf16 %v434_v14, %v415_v13 }
 0x177   :  { %v1403_v16 = vunpack.c.l.bf16 %v443_v15  ;;  %v1405_v17 = vunpack.c.h.bf16 %v443_v15 }
 0x179   :  { %v467_v19 = vmul.f32 0.044677734, %v1403_v16  ;;  %v468_v20 = vmul.f32 0.044677734, %v1405_v17 }
 0x17a   :  { %v416_v23 = vpop.f32.mrf.mxu2  ;;  %v435_v24 = vpop.f32.mrf.mxu3 }
 0x17b   :  { %v475_v25 = vpack.c.bf16 %v468_v20, %v467_v19  ;;  %v417_v26 = vadd.f32 %v416_v23, %v376_v18  ;;  %v436_v27 = vadd.f32 %v435_v24, %v376_v18 }
 0x17d   :  { %v479_v28 = vunpack.c.l.bf16 %v475_v25  ;;  %v480_v29 = vunpack.c.h.bf16 %v475_v25  ;;  %v444_v21 = vpack.c.bf16 %v436_v27, %v417_v26 }
 0x17f   :  { %v487_v22 = vmul.f32 %v479_v28, %v1403_v16  ;;  %v488_v30 = vmul.f32 %v480_v29, %v1405_v17  ;;  %v1411_v47 = vunpack.c.l.bf16 %v444_v21  ;;  %v1413_v31 = vunpack.c.h.bf16 %v444_v21 }
 0x181   :  { %v495_v32 = vpack.c.bf16 %v488_v30, %v487_v22  ;;  %v469_v33 = vmul.f32 0.044677734, %v1411_v47  ;;  %v470_v49 = vmul.f32 0.044677734, %v1413_v31 }
 0x182   :  { %v419_v0 = vpop.f32.mrf.mxu2  ;;  %v438_v34 = vpop.f32.mrf.mxu3 }
 0x183   :  { %v499_v1 = vunpack.c.l.bf16 %v495_v32  ;;  %v500_v35 = vunpack.c.h.bf16 %v495_v32  ;;  %v476_v36 = vpack.c.bf16 %v470_v49, %v469_v33  ;;  %v420_v37 = vadd.f32 %v419_v0, %v381_v48 }
 0x184   :  { %v439_v38 = vadd.f32 %v438_v34, %v381_v48 }
 0x185   :  { %v507_v39 = vmul.f32 %v499_v1, %v1403_v16  ;;  %v508_v50 = vmul.f32 %v500_v35, %v1405_v17  ;;  %v481_v40 = vunpack.c.l.bf16 %v476_v36  ;;  %v482_v41 = vunpack.c.h.bf16 %v476_v36 }
 0x186   :  { %v445_v42 = vpack.c.bf16 %v439_v38, %v420_v37 }
 0x187   :  { %v515_v43 = vpack.c.bf16 %v508_v50, %v507_v39  ;;  %v489_v44 = vmul.f32 %v481_v40, %v1411_v47  ;;  %v490_v45 = vmul.f32 %v482_v41, %v1413_v31 }
 0x188   :  { %v1421_v46 = vunpack.c.l.bf16 %v445_v42  ;;  %v1423_v51 = vunpack.c.h.bf16 %v445_v42 }
 0x189   :  { %v519_v52 = vunpack.c.l.bf16 %v515_v43  ;;  %v520_v53 = vunpack.c.h.bf16 %v515_v43  ;;  %v496_v54 = vpack.c.bf16 %v490_v45, %v489_v44 }
 0x18a   :  { %v471_v55 = vmul.f32 0.044677734, %v1421_v46  ;;  %v472_v56 = vmul.f32 0.044677734, %v1423_v51  ;;  %v421_v57 = vpop.f32.mrf.mxu2  ;;  %v440_v58 = vpop.f32.mrf.mxu3 }
 0x18b   :  { %v527_v60 = vadd.f32 %v519_v52, %v1403_v16  ;;  %v528_v61 = vadd.f32 %v520_v53, %v1405_v17  ;;  %v501_v62 = vunpack.c.l.bf16 %v496_v54  ;;  %v502_v63 = vunpack.c.h.bf16 %v496_v54 }
 0x18c   :  { %v477_v2 = vpack.c.bf16 %v472_v56, %v471_v55  ;;  %v422_v3 = vadd.f32 %v421_v57, %v386_v59  ;;  %v441_v4 = vadd.f32 %v440_v58, %v386_v59 }
 0x18d   :  { %v509_v5 = vmul.f32 %v501_v62, %v1411_v47  ;;  %v510_v6 = vmul.f32 %v502_v63, %v1413_v31  ;;  %v535_v10 = vpack.c.bf16 %v528_v61, %v527_v60 }
 0x18e   :  { %v483_v7 = vunpack.c.l.bf16 %v477_v2  ;;  %v484_v8 = vunpack.c.h.bf16 %v477_v2  ;;  %v446_v9 = vpack.c.bf16 %v441_v4, %v422_v3 }
 0x18f   :  { %v516_v11 = vpack.c.bf16 %v510_v6, %v509_v5  ;;  %v539_v25 = vunpack.c.l.bf16 %v535_v10  ;;  %v540_v26 = vunpack.c.h.bf16 %v535_v10 }
 0x190   :  { %v491_v12 = vmul.f32 %v483_v7, %v1421_v46  ;;  %v492_v13 = vmul.f32 %v484_v8, %v1423_v51  ;;  %v1433_v14 = vunpack.c.l.bf16 %v446_v9  ;;  %v1435_v15 = vunpack.c.h.bf16 %v446_v9 }
 0x191   :  { %v521_v18 = vunpack.c.l.bf16 %v516_v11  ;;  %v522_v19 = vunpack.c.h.bf16 %v516_v11  ;;  %v547_v0 = vmul.f32 0.796875, %v539_v25  ;;  %v548_v34 = vmul.f32 0.796875, %v540_v26 }
 0x192   :  { %v497_v20 = vpack.c.bf16 %v492_v13, %v491_v12  ;;  %v473_v23 = vmul.f32 0.044677734, %v1433_v14  ;;  %v474_v24 = vmul.f32 0.044677734, %v1435_v15 }
 0x193   :  { %v529_v27 = vadd.f32 %v521_v18, %v1411_v47  ;;  %v530_v28 = vadd.f32 %v522_v19, %v1413_v31  ;;  %v555_v43 = vpack.c.bf16 %v548_v34, %v547_v0 }
 0x194   :  { %v503_v29 = vunpack.c.l.bf16 %v497_v20  ;;  %v504_v21 = vunpack.c.h.bf16 %v497_v20  ;;  %v478_v22 = vpack.c.bf16 %v474_v24, %v473_v23 }
 0x195   :  { %v536_v30 = vpack.c.bf16 %v530_v28, %v529_v27  ;;  %v559_v61 = vunpack.c.l.bf16 %v555_v43  ;;  %v560_v62 = vunpack.c.h.bf16 %v555_v43 }
 0x196   :  { %v511_v48 = vmul.f32 %v503_v29, %v1421_v46  ;;  %v512_v32 = vmul.f32 %v504_v21, %v1423_v51  ;;  %v485_v33 = vunpack.c.l.bf16 %v478_v22  ;;  %v486_v49 = vunpack.c.h.bf16 %v478_v22 }
 0x197   :  { %v541_v1 = vunpack.c.l.bf16 %v536_v30  ;;  %v542_v35 = vunpack.c.h.bf16 %v536_v30  ;;  %1138 = vtanh.f32 %v559_v61 }
 0x198   :  { %v517_v36 = vpack.c.bf16 %v512_v32, %v511_v48  ;;  %v493_v37 = vmul.f32 %v485_v33, %v1433_v14  ;;  %v494_v38 = vmul.f32 %v486_v49, %v1435_v15  ;;  %1140 = vtanh.f32 %v560_v62 }
 0x199   :  { %v549_v39 = vmul.f32 0.796875, %v541_v1  ;;  %v550_v50 = vmul.f32 0.796875, %v542_v35 }
 0x19a   :  { %v523_v40 = vunpack.c.l.bf16 %v517_v36  ;;  %v524_v41 = vunpack.c.h.bf16 %v517_v36  ;;  %v498_v42 = vpack.c.bf16 %v494_v38, %v493_v37 }
 0x19b   :  { %v556_v54 = vpack.c.bf16 %v550_v50, %v549_v39  ;;  %v459_v50 = vmul.f32 0.5, %v1421_v46 }
 0x19c   :  { %v531_v44 = vadd.f32 %v523_v40, %v1421_v46  ;;  %v532_v45 = vadd.f32 %v524_v41, %v1423_v51  ;;  %v505_v52 = vunpack.c.l.bf16 %v498_v42  ;;  %v506_v53 = vunpack.c.h.bf16 %v498_v42 }
 0x19d   :  { %v561_v63 = vunpack.c.l.bf16 %v556_v54  ;;  %v562_v6 = vunpack.c.h.bf16 %v556_v54  ;;  %v1139_v19 = vpop.eup %1138  ;;  %v460_v40 = vmul.f32 0.5, %v1423_v51  ;;  %v461_v41 = vmul.f32 0.5, %v1433_v14 }
 0x19e   :  { %v537_v55 = vpack.c.bf16 %v532_v45, %v531_v44  ;;  %v513_v56 = vmul.f32 %v505_v52, %v1433_v14  ;;  %v514_v57 = vmul.f32 %v506_v53, %v1435_v15  ;;  %v1141_v24 = vpop.eup %1140  ;;  %v462_v42 = vmul.f32 0.5, %v1435_v15 }
 0x19f   :  { %1142 = vtanh.f32 %v561_v63  ;;  %v575_v32 = vpack.c.bf16 %v1141_v24, %v1139_v19  ;;  %v455_v44 = vmul.f32 0.5, %v1403_v16  ;;  %v457_v53 = vmul.f32 0.5, %v1411_v47 }
 0x1a0   :  { %v543_v58 = vunpack.c.l.bf16 %v537_v55  ;;  %v544_v59 = vunpack.c.h.bf16 %v537_v55  ;;  %v518_v60 = vpack.c.bf16 %v514_v57, %v513_v56  ;;  %1144 = vtanh.f32 %v562_v6 }
 0x1a1   :  { %v579_v1 = vunpack.c.l.bf16 %v575_v32  ;;  %v580_v35 = vunpack.c.h.bf16 %v575_v32  ;;  %v458_v54 = vmul.f32 0.5, %v1413_v31  ;;  %v456_v51 = vmul.f32 0.5, %v1405_v17  ;;  %v1113_v32 = vld [vmem:[%s1566_s5] sm:$0xff] }
 0x1a2   :  { %v551_v2 = vmul.f32 0.796875, %v543_v58  ;;  %v552_v3 = vmul.f32 0.796875, %v544_v59  ;;  %v525_v4 = vunpack.c.l.bf16 %v518_v60  ;;  %v526_v5 = vunpack.c.h.bf16 %v518_v60 }
 0x1a3   :  { %v587_v55 = vadd.f32 1.0, %v579_v1  ;;  %v588_v56 = vadd.f32 1.0, %v580_v35  ;;  %v465_v59 = vpack.c.bf16 %v460_v40, %v459_v50  ;;  %v464_v62 = vpack.c.bf16 %v458_v54, %v457_v53 }
 0x1a4   :  { %v533_v7 = vadd.f32 %v525_v4, %v1433_v14  ;;  %v534_v8 = vadd.f32 %v526_v5, %v1435_v15  ;;  %v557_v9 = vpack.c.bf16 %v552_v3, %v551_v2  ;;  %v466_v14 = vpack.c.bf16 %v462_v42, %v461_v41 }
 0x1a5   :  { %v1143_v25 = vpop.eup %1142  ;;  %v595_v16 = vpack.c.bf16 %v588_v56, %v587_v55  ;;  %v463_v47 = vpack.c.bf16 %v456_v51, %v455_v44  ;;  %v603_v4 = vunpack.c.l.bf16 %v465_v59  ;;  %v604_v5 = vunpack.c.h.bf16 %v465_v59 }
 0x1a6   :  { %v538_v10 = vpack.c.bf16 %v534_v8, %v533_v7  ;;  %v563_v11 = vunpack.c.l.bf16 %v557_v9  ;;  %v564_v12 = vunpack.c.h.bf16 %v557_v9  ;;  %v1145_v27 = vpop.eup %1144  ;;  %v605_v31 = vunpack.c.l.bf16 %v466_v14 }
 0x1a7   :  { %v576_v48 = vpack.c.bf16 %v1145_v27, %v1143_v25  ;;  %v606_v6 = vunpack.c.h.bf16 %v466_v14  ;;  %v601_v17 = vunpack.c.l.bf16 %v464_v62  ;;  %v599_v24 = vunpack.c.l.bf16 %v463_v47 }
 0x1a8   :  { %v545_v13 = vunpack.c.l.bf16 %v538_v10  ;;  %v546_v18 = vunpack.c.h.bf16 %v538_v10  ;;  %1146 = vtanh.f32 %v563_v11  ;;  %v607_v11 = vunpack.c.l.bf16 %v595_v16 }
 0x1a9   :  { %1148 = vtanh.f32 %v564_v12  ;;  %v581_v0 = vunpack.c.l.bf16 %v576_v48  ;;  %v582_v34 = vunpack.c.h.bf16 %v576_v48  ;;  %v602_v12 = vunpack.c.h.bf16 %v464_v62 }
 0x1aa   :  { %v553_v20 = vmul.f32 0.796875, %v545_v13  ;;  %v554_v23 = vmul.f32 0.796875, %v546_v18  ;;  %v608_v13 = vunpack.c.h.bf16 %v595_v16  ;;  %v600_v25 = vunpack.c.h.bf16 %v463_v47 }
 0x1ab   :  { %v589_v45 = vadd.f32 1.0, %v581_v0  ;;  %v590_v52 = vadd.f32 1.0, %v582_v34  ;;  %v638_v0 = vpop.permute.xlu1 %637 }
 0x1ac   :  { %v558_v26 = vpack.c.bf16 %v554_v23, %v553_v20 }
 0x1ad   :  { %v596_v61 = vpack.c.bf16 %v590_v52, %v589_v45 }
 0x1ae   :  { %v1147_v28 = vpop.eup %1146  ;;  %v565_v29 = vunpack.c.l.bf16 %v558_v26  ;;  %v566_v21 = vunpack.c.h.bf16 %v558_v26 }
 0x1af   :  { %v1149_v22 = vpop.eup %1148  ;;  %v609_v9 = vunpack.c.l.bf16 %v596_v61  ;;  %v610_v10 = vunpack.c.h.bf16 %v596_v61 }
 0x1b0   :  { %1150 = vtanh.f32 %v565_v29  ;;  %v577_v30 = vpack.c.bf16 %v1149_v22, %v1147_v28  ;;  %v616_v22 = vmul.f32 %v608_v13, %v600_v25 }
 0x1b1   :  { %1152 = vtanh.f32 %v566_v21  ;;  %v617_v28 = vmul.f32 %v609_v9, %v601_v17  ;;  %v618_v29 = vmul.f32 %v610_v10, %v602_v12  ;;  %v615_v21 = vmul.f32 %v607_v11, %v599_v24 }
 0x1b2   :  { %v583_v33 = vunpack.c.l.bf16 %v577_v30  ;;  %v584_v49 = vunpack.c.h.bf16 %v577_v30 }
 0x1b3   :  { %v623_v30 = vpack.c.bf16 %v617_v28, %v615_v21  ;;  %v624_v48 = vpack.c.bf16 %v618_v29, %v616_v22 }
 0x1b4   :  { %v591_v37 = vadd.f32 1.0, %v583_v33  ;;  %v592_v38 = vadd.f32 1.0, %v584_v49  ;;  %v1114_v33 = vld [vmem:[%s1566_s5 + $0x8] sm:$0xff]  ;;  %v648_v49 = vpop.permute.xlu2 %647 }
 0x1b6   :  { %v1151_v36 = vpop.eup %1150  ;;  %v597_v46 = vpack.c.bf16 %v592_v38, %v591_v37 }
 0x1b7   :  { %v1153_v39 = vpop.eup %1152 }
 0x1b8   :  { %v578_v43 = vpack.c.bf16 %v1153_v39, %v1151_v36  ;;  %v611_v2 = vunpack.c.l.bf16 %v597_v46  ;;  %v612_v3 = vunpack.c.h.bf16 %v597_v46 }
 0x1ba   :  { %v585_v57 = vunpack.c.l.bf16 %v578_v43  ;;  %v586_v58 = vunpack.c.h.bf16 %v578_v43  ;;  %v619_v18 = vmul.f32 %v611_v2, %v603_v4  ;;  %v620_v20 = vmul.f32 %v612_v3, %v604_v5 }
 0x1bc   :  { %v593_v60 = vadd.f32 1.0, %v585_v57  ;;  %v594_v15 = vadd.f32 1.0, %v586_v58  ;;  %v643_v50 = vpop.permute.xlu2 %642 }
 0x1be   :  { %v598_v63 = vpack.c.bf16 %v594_v15, %v593_v60 }
 0x1c0   :  { %v613_v7 = vunpack.c.l.bf16 %v598_v63  ;;  %v614_v8 = vunpack.c.h.bf16 %v598_v63 }
 0x1c2   :  { %v621_v19 = vmul.f32 %v613_v7, %v605_v31  ;;  %v622_v23 = vmul.f32 %v614_v8, %v606_v6 }
 0x1c4   :  { %v625_v26 = vpack.c.bf16 %v621_v19, %v619_v18  ;;  %v626_v27 = vpack.c.bf16 %v622_v23, %v620_v20  ;;  %v653_v23 = vpop.permute.xlu0 %652 }
 0x1c6   :  { %677 = vmatpush.bf16.msrb.mxu2 %v625_v26  ;;  %696 = vmatpush.bf16.msrb.mxu3 %v626_v27 }
 0x1ca   :  { %678 = vmatpush.bf16.msrb.mxu2 %v623_v30  ;;  %697 = vmatpush.bf16.msrb.mxu3 %v624_v48 }
 0x1cd   :  { %1085 = vmatmul.msk.bf16.vlgmr.msrb.gmra.mxu2 %vm398_vm3, %v1113_v32  ;;  %1087 = vmatmul.msk.bf16.vlgmr.msrb.gmra.mxu3 %vm398_vm3, %v1113_v32 }
 0x1dd   :  { %1086 = vmatmul.msk.bf16.gmra.mxu2 %vm398_vm3, %v1114_v33  ;;  %1088 = vmatmul.msk.bf16.gmra.mxu3 %vm398_vm3, %v1114_v33 }
 0x250   :  { %v680_v34 = vpop.f32.mrf.mxu2  ;;  %v699_v1 = vpop.f32.mrf.mxu3 }
 0x251   :  { %v681_v35 = vadd.f32 %v680_v34, %v638_v0  ;;  %v700_v36 = vadd.f32 %v699_v1, %v638_v0 }
 0x253   :  { %v709_v37 = vpack.c.bf16 %v700_v36, %v681_v35 }
 0x255   :  { %v1469_v38 = vunpack.c.l.bf16 %v709_v37  ;;  %v1471_v39 = vunpack.c.h.bf16 %v709_v37 }
 0x257   :  { %v733_v40 = vmul.f32 0.044677734, %v1469_v38  ;;  %v734_v41 = vmul.f32 0.044677734, %v1471_v39 }
 0x258   :  { %v682_v42 = vpop.f32.mrf.mxu2  ;;  %v701_v43 = vpop.f32.mrf.mxu3 }
 0x259   :  { %v741_v44 = vpack.c.bf16 %v734_v41, %v733_v40  ;;  %v683_v45 = vadd.f32 %v682_v42, %v643_v50  ;;  %v702_v52 = vadd.f32 %v701_v43, %v643_v50 }
 0x25b   :  { %v745_v53 = vunpack.c.l.bf16 %v741_v44  ;;  %v746_v54 = vunpack.c.h.bf16 %v741_v44  ;;  %v710_v55 = vpack.c.bf16 %v702_v52, %v683_v45 }
 0x25d   :  { %v753_v56 = vmul.f32 %v745_v53, %v1469_v38  ;;  %v754_v57 = vmul.f32 %v746_v54, %v1471_v39  ;;  %v1477_v58 = vunpack.c.l.bf16 %v710_v55  ;;  %v1479_v46 = vunpack.c.h.bf16 %v710_v55 }
 0x25f   :  { %v761_v51 = vpack.c.bf16 %v754_v57, %v753_v56  ;;  %v735_v59 = vmul.f32 0.044677734, %v1477_v58  ;;  %v736_v14 = vmul.f32 0.044677734, %v1479_v46 }
 0x260   :  { %v685_v60 = vpop.f32.mrf.mxu2  ;;  %v704_v15 = vpop.f32.mrf.mxu3 }
 0x261   :  { %v765_v61 = vunpack.c.l.bf16 %v761_v51  ;;  %v766_v62 = vunpack.c.h.bf16 %v761_v51  ;;  %v742_v16 = vpack.c.bf16 %v736_v14, %v735_v59  ;;  %v686_v63 = vadd.f32 %v685_v60, %v648_v49 }
 0x262   :  { %v705_v2 = vadd.f32 %v704_v15, %v648_v49 }
 0x263   :  { %v773_v3 = vmul.f32 %v765_v61, %v1469_v38  ;;  %v774_v47 = vmul.f32 %v766_v62, %v1471_v39  ;;  %v747_v4 = vunpack.c.l.bf16 %v742_v16  ;;  %v748_v31 = vunpack.c.h.bf16 %v742_v16 }
 0x264   :  { %v711_v5 = vpack.c.bf16 %v705_v2, %v686_v63 }
 0x265   :  { %v781_v6 = vpack.c.bf16 %v774_v47, %v773_v3  ;;  %v755_v7 = vmul.f32 %v747_v4, %v1477_v58  ;;  %v756_v8 = vmul.f32 %v748_v31, %v1479_v46 }
 0x266   :  { %v1487_v9 = vunpack.c.l.bf16 %v711_v5  ;;  %v1489_v10 = vunpack.c.h.bf16 %v711_v5 }
 0x267   :  { %v785_v17 = vunpack.c.l.bf16 %v781_v6  ;;  %v786_v11 = vunpack.c.h.bf16 %v781_v6  ;;  %v762_v12 = vpack.c.bf16 %v756_v8, %v755_v7 }
 0x268   :  { %v737_v13 = vmul.f32 0.044677734, %v1487_v9  ;;  %v738_v18 = vmul.f32 0.044677734, %v1489_v10  ;;  %v687_v19 = vpop.f32.mrf.mxu2  ;;  %v706_v20 = vpop.f32.mrf.mxu3 }
 0x269   :  { %v793_v24 = vadd.f32 %v785_v17, %v1469_v38  ;;  %v794_v25 = vadd.f32 %v786_v11, %v1471_v39  ;;  %v767_v26 = vunpack.c.l.bf16 %v762_v12  ;;  %v768_v27 = vunpack.c.h.bf16 %v762_v12 }
 0x26a   :  { %v743_v28 = vpack.c.bf16 %v738_v18, %v737_v13  ;;  %v688_v29 = vadd.f32 %v687_v19, %v653_v23  ;;  %v707_v21 = vadd.f32 %v706_v20, %v653_v23 }
 0x26b   :  { %v775_v22 = vmul.f32 %v767_v26, %v1477_v58  ;;  %v776_v30 = vmul.f32 %v768_v27, %v1479_v46  ;;  %v801_v49 = vpack.c.bf16 %v794_v25, %v793_v24 }
 0x26c   :  { %v749_v48 = vunpack.c.l.bf16 %v743_v28  ;;  %v750_v32 = vunpack.c.h.bf16 %v743_v28  ;;  %v712_v33 = vpack.c.bf16 %v707_v21, %v688_v29 }
 0x26d   :  { %v782_v0 = vpack.c.bf16 %v776_v30, %v775_v22  ;;  %v805_v43 = vunpack.c.l.bf16 %v801_v49  ;;  %v806_v44 = vunpack.c.h.bf16 %v801_v49 }
 0x26e   :  { %v757_v34 = vmul.f32 %v749_v48, %v1487_v9  ;;  %v758_v1 = vmul.f32 %v750_v32, %v1489_v10  ;;  %v1499_v35 = vunpack.c.l.bf16 %v712_v33  ;;  %v1501_v36 = vunpack.c.h.bf16 %v712_v33 }
 0x26f   :  { %v787_v37 = vunpack.c.l.bf16 %v782_v0  ;;  %v788_v50 = vunpack.c.h.bf16 %v782_v0  ;;  %v813_v60 = vmul.f32 0.796875, %v805_v43  ;;  %v814_v15 = vmul.f32 0.796875, %v806_v44 }
 0x270   :  { %v763_v40 = vpack.c.bf16 %v758_v1, %v757_v34  ;;  %v739_v41 = vmul.f32 0.044677734, %v1499_v35  ;;  %v740_v42 = vmul.f32 0.044677734, %v1501_v36 }
 0x271   :  { %v795_v45 = vadd.f32 %v787_v37, %v1477_v58  ;;  %v796_v52 = vadd.f32 %v788_v50, %v1479_v46  ;;  %v821_v6 = vpack.c.bf16 %v814_v15, %v813_v60 }
 0x272   :  { %v769_v53 = vunpack.c.l.bf16 %v763_v40  ;;  %v770_v54 = vunpack.c.h.bf16 %v763_v40  ;;  %v744_v55 = vpack.c.bf16 %v740_v42, %v739_v41 }
 0x273   :  { %v802_v56 = vpack.c.bf16 %v796_v52, %v795_v45  ;;  %v825_v25 = vunpack.c.l.bf16 %v821_v6  ;;  %v826_v26 = vunpack.c.h.bf16 %v821_v6 }
 0x274   :  { %v777_v57 = vmul.f32 %v769_v53, %v1487_v9  ;;  %v778_v51 = vmul.f32 %v770_v54, %v1489_v10  ;;  %v751_v59 = vunpack.c.l.bf16 %v744_v55  ;;  %v752_v14 = vunpack.c.h.bf16 %v744_v55 }
 0x275   :  { %v807_v61 = vunpack.c.l.bf16 %v802_v56  ;;  %v808_v62 = vunpack.c.h.bf16 %v802_v56  ;;  %1154 = vtanh.f32 %v825_v25 }
 0x276   :  { %v783_v16 = vpack.c.bf16 %v778_v51, %v777_v57  ;;  %v759_v63 = vmul.f32 %v751_v59, %v1499_v35  ;;  %v760_v2 = vmul.f32 %v752_v14, %v1501_v36  ;;  %1156 = vtanh.f32 %v826_v26 }
 0x277   :  { %v815_v3 = vmul.f32 0.796875, %v807_v61  ;;  %v816_v47 = vmul.f32 0.796875, %v808_v62 }
 0x278   :  { %v789_v4 = vunpack.c.l.bf16 %v783_v16  ;;  %v790_v31 = vunpack.c.h.bf16 %v783_v16  ;;  %v764_v5 = vpack.c.bf16 %v760_v2, %v759_v63 }
 0x279   :  { %v822_v12 = vpack.c.bf16 %v816_v47, %v815_v3  ;;  %v725_v47 = vmul.f32 0.5, %v1487_v9 }
 0x27a   :  { %v797_v7 = vadd.f32 %v789_v4, %v1487_v9  ;;  %v798_v8 = vadd.f32 %v790_v31, %v1489_v10  ;;  %v771_v17 = vunpack.c.l.bf16 %v764_v5  ;;  %v772_v11 = vunpack.c.h.bf16 %v764_v5 }
 0x27b   :  { %v827_v27 = vunpack.c.l.bf16 %v822_v12  ;;  %v828_v30 = vunpack.c.h.bf16 %v822_v12  ;;  %v1155_v50 = vpop.eup %1154  ;;  %v726_v4 = vmul.f32 0.5, %v1489_v10  ;;  %v727_v31 = vmul.f32 0.5, %v1499_v35 }
 0x27c   :  { %v803_v13 = vpack.c.bf16 %v798_v8, %v797_v7  ;;  %v779_v18 = vmul.f32 %v771_v17, %v1499_v35  ;;  %v780_v19 = vmul.f32 %v772_v11, %v1501_v36  ;;  %v1157_v42 = vpop.eup %1156  ;;  %v728_v5 = vmul.f32 0.5, %v1501_v36 }
 0x27d   :  { %1158 = vtanh.f32 %v827_v27  ;;  %v841_v51 = vpack.c.bf16 %v1157_v42, %v1155_v50  ;;  %v721_v7 = vmul.f32 0.5, %v1469_v38  ;;  %v723_v11 = vmul.f32 0.5, %v1477_v58 }
 0x27e   :  { %v809_v20 = vunpack.c.l.bf16 %v803_v13  ;;  %v810_v23 = vunpack.c.h.bf16 %v803_v13  ;;  %v784_v24 = vpack.c.bf16 %v780_v19, %v779_v18  ;;  %1160 = vtanh.f32 %v828_v30 }
 0x27f   :  { %v845_v61 = vunpack.c.l.bf16 %v841_v51  ;;  %v846_v62 = vunpack.c.h.bf16 %v841_v51  ;;  %v724_v12 = vmul.f32 0.5, %v1479_v46  ;;  %v722_v10 = vmul.f32 0.5, %v1471_v39  ;;  %v893_v51 = vld [vmem:[%s1567_s7] sm:$0xf] }
 0x280   :  { %v817_v28 = vmul.f32 0.796875, %v809_v20  ;;  %v818_v29 = vmul.f32 0.796875, %v810_v23  ;;  %v791_v21 = vunpack.c.l.bf16 %v784_v24  ;;  %v792_v22 = vunpack.c.h.bf16 %v784_v24 }
 0x281   :  { %v853_v13 = vadd.f32 1.0, %v845_v61  ;;  %v854_v18 = vadd.f32 1.0, %v846_v62  ;;  %v731_v23 = vpack.c.bf16 %v726_v4, %v725_v47  ;;  %v730_v26 = vpack.c.bf16 %v724_v12, %v723_v11 }
 0x282   :  { %v823_v48 = vpack.c.bf16 %v818_v29, %v817_v28  ;;  %v799_v32 = vadd.f32 %v791_v21, %v1499_v35  ;;  %v800_v33 = vadd.f32 %v792_v22, %v1501_v36  ;;  %v732_v35 = vpack.c.bf16 %v728_v5, %v727_v31 }
 0x283   :  { %v1159_v43 = vpop.eup %1158  ;;  %v861_v38 = vpack.c.bf16 %v854_v18, %v853_v13  ;;  %v729_v58 = vpack.c.bf16 %v722_v10, %v721_v7  ;;  %v869_v21 = vunpack.c.l.bf16 %v731_v23  ;;  %v870_v22 = vunpack.c.h.bf16 %v731_v23  ;;  %v952_v18 = vpop.permute.xlu2 %951 }
 0x284   :  { %v804_v49 = vpack.c.bf16 %v800_v33, %v799_v32  ;;  %v829_v0 = vunpack.c.l.bf16 %v823_v48  ;;  %v830_v34 = vunpack.c.h.bf16 %v823_v48  ;;  %v1161_v45 = vpop.eup %1160  ;;  %v871_v46 = vunpack.c.l.bf16 %v732_v35 }
 0x285   :  { %v842_v57 = vpack.c.bf16 %v1161_v45, %v1159_v43  ;;  %v872_v30 = vunpack.c.h.bf16 %v732_v35  ;;  %v867_v39 = vunpack.c.l.bf16 %v730_v26  ;;  %v865_v42 = vunpack.c.l.bf16 %v729_v58 }
 0x286   :  { %v811_v1 = vunpack.c.l.bf16 %v804_v49  ;;  %v812_v37 = vunpack.c.h.bf16 %v804_v49  ;;  %1162 = vtanh.f32 %v829_v0  ;;  %v873_v0 = vunpack.c.l.bf16 %v861_v38 }
 0x287   :  { %1164 = vtanh.f32 %v830_v34  ;;  %v847_v60 = vunpack.c.l.bf16 %v842_v57  ;;  %v848_v15 = vunpack.c.h.bf16 %v842_v57  ;;  %v868_v34 = vunpack.c.h.bf16 %v730_v26 }
 0x288   :  { %v819_v40 = vmul.f32 0.796875, %v811_v1  ;;  %v820_v41 = vmul.f32 0.796875, %v812_v37  ;;  %v874_v1 = vunpack.c.h.bf16 %v861_v38  ;;  %v866_v43 = vunpack.c.h.bf16 %v729_v58 }
 0x289   :  { %v855_v8 = vadd.f32 1.0, %v847_v60  ;;  %v856_v17 = vadd.f32 1.0, %v848_v15  ;;  %v947_v60 = vpop.permute.xlu1 %946  ;;  %v942_v15 = vpop.permute.xlu0 %941 }
 0x28a   :  { %v824_v44 = vpack.c.bf16 %v820_v41, %v819_v40 }
 0x28b   :  { %v862_v25 = vpack.c.bf16 %v856_v17, %v855_v8 }
 0x28c   :  { %v1163_v52 = vpop.eup %1162  ;;  %v831_v53 = vunpack.c.l.bf16 %v824_v44  ;;  %v832_v54 = vunpack.c.h.bf16 %v824_v44 }
 0x28d   :  { %v1165_v55 = vpop.eup %1164  ;;  %v875_v33 = vunpack.c.l.bf16 %v862_v25  ;;  %v876_v49 = vunpack.c.h.bf16 %v862_v25 }
 0x28e   :  { %1166 = vtanh.f32 %v831_v53  ;;  %v843_v56 = vpack.c.bf16 %v1165_v55, %v1163_v52  ;;  %v882_v55 = vmul.f32 %v874_v1, %v866_v43 }
 0x28f   :  { %1168 = vtanh.f32 %v832_v54  ;;  %v883_v52 = vmul.f32 %v875_v33, %v867_v39  ;;  %v884_v53 = vmul.f32 %v876_v49, %v868_v34  ;;  %v881_v54 = vmul.f32 %v873_v0, %v865_v42 }
 0x290   :  { %v849_v59 = vunpack.c.l.bf16 %v843_v56  ;;  %v850_v14 = vunpack.c.h.bf16 %v843_v56 }
 0x291   :  { %v889_v56 = vpack.c.bf16 %v883_v52, %v881_v54  ;;  %v890_v57 = vpack.c.bf16 %v884_v53, %v882_v55  ;;  %v957_v35 = vpop.permute.xlu0 %956 }
 0x292   :  { %v857_v63 = vadd.f32 1.0, %v849_v59  ;;  %v858_v2 = vadd.f32 1.0, %v850_v14  ;;  %v1115_v59 = vld [vmem:[%s1568_s9] sm:$0xff]  ;;  %v1116_v14 = vld [vmem:[%s1568_s9 + $0x8] sm:$0xff] }
 0x294   :  { %v1167_v16 = vpop.eup %1166  ;;  %v863_v9 = vpack.c.bf16 %v858_v2, %v857_v63 }
 0x295   :  { %v1169_v3 = vpop.eup %1168 }
 0x296   :  { %v844_v6 = vpack.c.bf16 %v1169_v3, %v1167_v16  ;;  %v877_v28 = vunpack.c.l.bf16 %v863_v9  ;;  %v878_v29 = vunpack.c.h.bf16 %v863_v9  ;;  %v898_v3 = vpop.permute.xlu1 %897 }
 0x298   :  { %v851_v19 = vunpack.c.l.bf16 %v844_v6  ;;  %v852_v20 = vunpack.c.h.bf16 %v844_v6  ;;  %v885_v37 = vmul.f32 %v877_v28, %v869_v21  ;;  %v886_v40 = vmul.f32 %v878_v29, %v870_v22 }
 0x29a   :  { %v859_v24 = vadd.f32 1.0, %v851_v19  ;;  %v860_v36 = vadd.f32 1.0, %v852_v20 }
 0x29c   :  { %v864_v27 = vpack.c.bf16 %v860_v36, %v859_v24 }
 0x29e   :  { %v879_v48 = vunpack.c.l.bf16 %v864_v27  ;;  %v880_v32 = vunpack.c.h.bf16 %v864_v27 }
 0x2a0   :  { %v887_v50 = vmul.f32 %v879_v48, %v871_v46  ;;  %v888_v41 = vmul.f32 %v880_v32, %v872_v30 }
 0x2a2   :  { %v891_v44 = vpack.c.bf16 %v887_v50, %v885_v37  ;;  %v892_v45 = vpack.c.bf16 %v888_v41, %v886_v40 }
 0x2a4   :  { %909 = vmatpush.bf16.msra.mxu2 %v891_v44  ;;  %922 = vmatpush.bf16.msra.mxu3 %v892_v45 }
 0x2a5   :  { %981 = vmatpush.bf16.msrb.mxu0 %v891_v44  ;;  %1000 = vmatpush.bf16.msrb.mxu1 %v892_v45 }
 0x2a8   :  { %910 = vmatpush.bf16.msra.mxu2 %v889_v56  ;;  %923 = vmatpush.bf16.msra.mxu3 %v890_v57 }
 0x2a9   :  { %982 = vmatpush.bf16.msrb.mxu0 %v889_v56  ;;  %1001 = vmatpush.bf16.msrb.mxu1 %v890_v57 }
 0x2ab   :  { %1089 = vmatmul.msk.bf16.vlgmr.msra.gmra.mxu2 %vm398_vm3, %v893_v51  ;;  %1090 = vmatmul.msk.bf16.vlgmr.msra.gmra.mxu3 %vm398_vm3, %v893_v51 }
 0x2ac   :  { %1099 = vmatmul.msk.bf16.vlgmr.msrb.gmra.mxu0 %vm398_vm3, %v1115_v59  ;;  %1101 = vmatmul.msk.bf16.vlgmr.msrb.gmra.mxu1 %vm398_vm3, %v1115_v59 }
 0x2bc   :  { %1100 = vmatmul.msk.bf16.gmra.mxu0 %vm398_vm3, %v1116_v14  ;;  %1102 = vmatmul.msk.bf16.gmra.mxu1 %vm398_vm3, %v1116_v14 }
 0x329   :  { %v984_v61 = vpop.f32.mrf.mxu0  ;;  %v1003_v62 = vpop.f32.mrf.mxu1 }
 0x32a   :  { %v985_v16 = vadd.f32 %v984_v61, %v942_v15  ;;  %v1004_v63 = vadd.f32 %v1003_v62, %v942_v15 }
 0x32c   :  { %v1013_v2 = vpack.c.bf16 %v1004_v63, %v985_v16 }
 0x32e   :  { %1017 = vst [vmem:[%s1569_s12] sm:$0xff] %v1013_v2  ;;  %v912_v47 = vpop.f32.mrf.mxu2  ;;  %v925_v4 = vpop.f32.mrf.mxu3 }
 0x32f   :  { %v913_v31 = vadd.f32 %v912_v47, %v898_v3  ;;  %v926_v5 = vadd.f32 %v925_v4, %v898_v3 }
 0x331   :  { %929 = vst [vmem:[%s1570_s11] sm:$0xff] %v913_v31  ;;  %v986_v6 = vpop.f32.mrf.mxu0  ;;  %v1005_v7 = vpop.f32.mrf.mxu1 }
 0x332   :  { %930 = vst [vmem:[%s1570_s11 + $0x8] sm:$0xff] %v926_v5  ;;  %v987_v8 = vadd.f32 %v986_v6, %v947_v60  ;;  %v1006_v17 = vadd.f32 %v1005_v7, %v947_v60 }
 0x334   :  { %v1014_v11 = vpack.c.bf16 %v1006_v17, %v987_v8 }
 0x336   :  { %1018 = vst [vmem:[%s1569_s12 + $0x8] sm:$0xff] %v1014_v11  ;;  %v914_v12 = vpop.f32.mrf.mxu2  ;;  %v927_v13 = vpop.f32.mrf.mxu3 }
 0x339   :  { %v989_v19 = vpop.f32.mrf.mxu0  ;;  %v1008_v20 = vpop.f32.mrf.mxu1 }
 0x33a   :  { %v990_v9 = vadd.f32 %v989_v19, %v952_v18  ;;  %v1009_v10 = vadd.f32 %v1008_v20, %v952_v18 }
 0x33c   :  { %v1015_v23 = vpack.c.bf16 %v1009_v10, %v990_v9 }
 0x33e   :  { %1019 = vst [vmem:[%s1569_s12 + $0x10] sm:$0xff] %v1015_v23 }
 0x341   :  { %v991_v24 = vpop.f32.mrf.mxu0  ;;  %v1010_v36 = vpop.f32.mrf.mxu1 }
 0x342   :  { %v992_v25 = vadd.f32 %v991_v24, %v957_v35  ;;  %v1011_v26 = vadd.f32 %v1010_v36, %v957_v35 }
 0x344   :  { %v1016_v38 = vpack.c.bf16 %v1011_v26, %v992_v25 }
 0x346   :  { %1020 = vst [vmem:[%s1569_s12 + $0x18] sm:$0xff] %v1016_v38 }

</bundles_post_ra>
